<compile_context>
chip_gen: v7x
topology: tpu7x:2x2x1
jax: 0.10.0
libtpu: 0.0.40
codegen_flags: <defaults>
</compile_context>

<pallas_src>
import functools

import jax
import jax.numpy as jnp
from jax.experimental import pallas as pl
from jax.experimental.pallas import tpu as pltpu


def gin_kernel(aT_ref, xT_ref, w1_ref, b1_ref, w2_ref, b2_ref, o_ref):
    # One packed group of graphs per grid step (leading size-1 dims are squeezed away by
    # the BlockSpecs, so all refs here are 2-D).
    aT = aT_ref[...]                   # [R, R]    bf16, block-diag (A + I)^T
    xT = xT_ref[...]                   # [Din, R]  bf16, feature-major node features

    # ---- conv1: h1^T = relu(W1 @ ((A+I) @ x)^T + b1) ---------------------------------
    agg1 = jnp.dot(xT, aT, preferred_element_type=jnp.float32)            # [Din, R] f32
    h1 = jnp.dot(w1_ref[...], agg1.astype(jnp.bfloat16),
                 preferred_element_type=jnp.float32) + b1_ref[...]        # [H, R]
    h1 = jnp.maximum(h1, 0.0)                                             # ReLU (f32 VPU)

    # Dropout is identity in eval mode (training=False).

    # ---- conv2 (reassociated): h2^T = (W2 @ h1^T) @ (A+I)^T + b2 ----------------------
    p2 = jnp.dot(w2_ref[...], h1.astype(jnp.bfloat16),
                 preferred_element_type=jnp.float32)                      # [Dout, R]
    h2 = jnp.dot(p2.astype(jnp.bfloat16), aT,
                 preferred_element_type=jnp.float32) + b2_ref[...]        # [Dout, R]

    # ---- log_softmax over the feature dim (PyTorch dim=1 == axis 0 here) --------------
    m = jnp.max(h2, axis=0, keepdims=True)                                # [1, R]
    z = h2 - m
    lse = jnp.log(jnp.sum(jnp.exp(z), axis=0, keepdims=True))
    o_ref[...] = (z - lse).astype(o_ref.dtype)                            # lane-dense store


def _build_adjT(edge_index, n):
    # A[i, j] = #edges j -> i  =>  A^T = scatter at (src, dst).  Fold eps=0 self term as +I.
    # Entries are small integer counts: exact in bf16 as long as every entry <= 256.
    adjT = jnp.zeros((n, n), jnp.float32).at[edge_index[0], edge_index[1]].add(1.0)
    return adjT + jnp.eye(n, dtype=jnp.float32)


def _blockdiag(blocks):
    # blocks: [Ggrp, N, N] -> block-diagonal [Ggrp*N, Ggrp*N]
    ggrp, n, _ = blocks.shape
    eye = jnp.eye(ggrp, dtype=blocks.dtype)
    return jnp.einsum("gp,gij->gipj", eye, blocks).reshape(ggrp * n, ggrp * n)


def gin_forward_batched(x, edge_index, w1, b1, w2, b2, *, rows_per_block=128):
    """Batched forward over many small graphs.

    x:          [G, N, Din] float32
    edge_index: [G, 2, E]   int32  (row 0 = src, row 1 = dst)
    w1: [H, Din], b1: [H], w2: [Dout, H], b2: [Dout]   (PyTorch nn.Linear orientation)
    Returns [G, N, Dout] float32 log-probabilities.

    rows_per_block: target packed rows per grid step.  128 is the v5e MXU granule; use
    256 on v6e/v7x if enough graphs are available (v6e MXU is 2x256x256).
    """
    g, n, din = x.shape
    hid = w1.shape[0]
    dout = w2.shape[0]

    graphs_per_group = max(1, rows_per_block // n)
    assert g % graphs_per_group == 0, "num_graphs must be divisible by graphs_per_group"
    ngrp = g // graphs_per_group
    r = graphs_per_group * n

    # ---- plain-JAX glue: block-diagonal (A+I)^T and feature-major X^T per group -------
    adjT = jax.vmap(functools.partial(_build_adjT, n=n))(edge_index)       # [G, N, N]
    adjT_grp = jax.vmap(_blockdiag)(
        adjT.reshape(ngrp, graphs_per_group, n, n)).astype(jnp.bfloat16)   # [Ngrp, R, R]
    xT_grp = (x.reshape(ngrp, graphs_per_group, n, din)
              .transpose(0, 3, 1, 2)
              .reshape(ngrp, din, r)
              .astype(jnp.bfloat16))                                       # [Ngrp, Din, R]

    w1_bf = w1.astype(jnp.bfloat16)                                        # [H, Din]
    w2_bf = w2.astype(jnp.bfloat16)                                        # [Dout, H]
    b1_c = b1.reshape(hid, 1).astype(jnp.float32)                          # broadcast over lanes
    b2_c = b2.reshape(dout, 1).astype(jnp.float32)

    flops = 2 * ngrp * (din * r * r + hid * din * r + dout * hid * r + dout * r * r)
    bytes_accessed = (2 * ngrp * r * r + 2 * ngrp * din * r
                      + 2 * hid * din + 4 * hid + 2 * dout * hid + 4 * dout
                      + 4 * ngrp * dout * r)

    outT = pl.pallas_call(
        gin_kernel,
        out_shape=jax.ShapeDtypeStruct((ngrp, dout, r), jnp.float32),
        grid=(ngrp,),
        in_specs=[
            pl.BlockSpec((None, r, r), lambda i: (i, 0, 0)),      # per-group (A+I)^T
            pl.BlockSpec((None, din, r), lambda i: (i, 0, 0)),    # per-group X^T
            pl.BlockSpec((hid, din), lambda i: (0, 0)),           # shared weights (resident)
            pl.BlockSpec((hid, 1), lambda i: (0, 0)),
            pl.BlockSpec((dout, hid), lambda i: (0, 0)),
            pl.BlockSpec((dout, 1), lambda i: (0, 0)),
        ],
        out_specs=pl.BlockSpec((None, dout, r), lambda i: (i, 0, 0)),
        compiler_params=pltpu.CompilerParams(
            dimension_semantics=("parallel",)),
        cost_estimate=pl.CostEstimate(
            flops=flops,
            transcendentals=g * n * (dout + 1),
            bytes_accessed=bytes_accessed),
    )(adjT_grp, xT_grp, w1_bf, b1_c, w2_bf, b2_c)

    # Unpack [Ngrp, Dout, R] -> [G, N, Dout]
    return (outT.reshape(ngrp, dout, graphs_per_group, n)
            .transpose(0, 2, 3, 1)
            .reshape(g, n, dout))


def _reference_f32(x, edge_index, w1, b1, w2, b2):
    # Full-f32 reference of the PyTorch module (eval mode), one graph.
    n = x.shape[0]
    adj = jnp.zeros((n, n), jnp.float32).at[edge_index[1], edge_index[0]].add(1.0)
    h1 = jax.nn.relu((adj @ x + x) @ w1.T + b1)
    h2 = (adj @ h1 + h1) @ w2.T + b2
    return jax.nn.log_softmax(h2, axis=1)


def _reference_bf16(x, edge_index, w1, b1, w2, b2):
    # Same mixed-precision / reassociation policy as the kernel, one graph, standard layout.
    n = x.shape[0]
    a = (jnp.zeros((n, n), jnp.float32).at[edge_index[1], edge_index[0]].add(1.0)
         + jnp.eye(n, dtype=jnp.float32)).astype(jnp.bfloat16)
    xb = x.astype(jnp.bfloat16)
    agg1 = jnp.dot(a, xb, preferred_element_type=jnp.float32)
    h1 = jnp.maximum(
        jnp.dot(agg1.astype(jnp.bfloat16), w1.astype(jnp.bfloat16).T,
                preferred_element_type=jnp.float32) + b1[None, :], 0.0)
    p2 = jnp.dot(h1.astype(jnp.bfloat16), w2.astype(jnp.bfloat16).T,
                 preferred_element_type=jnp.float32)
    h2 = jnp.dot(a, p2.astype(jnp.bfloat16),
                 preferred_element_type=jnp.float32) + b2[None, :]
    return jax.nn.log_softmax(h2, axis=1)


if __name__ == "__main__":
    key = jax.random.PRNGKey(0)
    k_x, k_e, k_w1, k_b1, k_w2, k_b2 = jax.random.split(key, 6)

    num_graphs = 16      # 2 groups of 8 graphs -> grid=(2,), 128 packed rows per step
    num_nodes = 16
    num_edges = 40
    input_dim = 16
    hid_dim = 32
    out_dim = 8

    x = jax.random.normal(k_x, (num_graphs, num_nodes, input_dim), dtype=jnp.float32)
    edge_index = jax.random.randint(
        k_e, (num_graphs, 2, num_edges), 0, num_nodes, dtype=jnp.int32)

    # Deterministic parameter init (kaiming-uniform-ish scale, like nn.Linear),
    # kept in PyTorch orientation: weight [fan_out, fan_in], bias [fan_out].
    def init_linear(kw, kb, fan_in, fan_out):
        bound = 1.0 / jnp.sqrt(jnp.float32(fan_in))
        w = jax.random.uniform(kw, (fan_out, fan_in), jnp.float32, -bound, bound)
        b = jax.random.uniform(kb, (fan_out,), jnp.float32, -bound, bound)
        return w, b

    w1, b1 = init_linear(k_w1, k_b1, input_dim, hid_dim)   # line1: Linear(input_dim, hid_dim)
    w2, b2 = init_linear(k_w2, k_b2, hid_dim, out_dim)     # line2: Linear(hid_dim, out_dim)

    out = gin_forward_batched(x, edge_index, w1, b1, w2, b2, rows_per_block=128)
    out = jax.block_until_ready(out)
    assert out.shape == (num_graphs, num_nodes, out_dim)

    ref_bf16 = jax.vmap(lambda xi, ei: _reference_bf16(xi, ei, w1, b1, w2, b2))(x, edge_index)
    ref_f32 = jax.vmap(lambda xi, ei: _reference_f32(xi, ei, w1, b1, w2, b2))(x, edge_index)

    # Tight check against the same bf16-MXU / f32-accumulate / reassociated computation.
    assert jnp.allclose(out, ref_bf16, atol=3e-2, rtol=3e-2), "mismatch vs bf16-policy reference"
    # Sanity check against full-f32 module semantics (only bf16 rounding drift differs).
    assert jnp.allclose(out, ref_f32, atol=1.5e-1, rtol=1e-1), "mismatch vs f32 reference"

    print("KERNEL_OK")
</pallas_src>

<mosaic_0001>
module attributes {stable_mosaic.version = 11 : i64} {
  func.func @gin_kernel(%arg0: i32, %arg1: memref<1x128x128xbf16, #tpu.memory_space<vmem>>, %arg2: memref<1x16x128xbf16, #tpu.memory_space<vmem>>, %arg3: memref<32x16xbf16, #tpu.memory_space<vmem>>, %arg4: memref<32x1xf32, #tpu.memory_space<vmem>>, %arg5: memref<8x32xbf16, #tpu.memory_space<vmem>>, %arg6: memref<8x1xf32, #tpu.memory_space<vmem>>, %arg7: memref<1x8x128xf32, #tpu.memory_space<vmem>>) attributes {dimension_semantics = [#tpu.dimension_semantics<parallel>], iteration_bounds = array<i64: 2>, scalar_prefetch = 0 : i64, scratch_operands = 0 : i64, tpu.core_type = #tpu.core_type<tc>, window_params = [{transform_indices = @transform_0, window_bounds = array<i64: 1, 128, 128>}, {transform_indices = @transform_1, window_bounds = array<i64: 1, 16, 128>}, {pipeline_mode = #tpu.pipeline_mode<synchronous>, transform_indices = @transform_2, window_bounds = array<i64: 32, 16>}, {pipeline_mode = #tpu.pipeline_mode<synchronous>, transform_indices = @transform_3, window_bounds = array<i64: 32, 1>}, {pipeline_mode = #tpu.pipeline_mode<synchronous>, transform_indices = @transform_4, window_bounds = array<i64: 8, 32>}, {pipeline_mode = #tpu.pipeline_mode<synchronous>, transform_indices = @transform_5, window_bounds = array<i64: 8, 1>}, {transform_indices = @transform_6, window_bounds = array<i64: 1, 8, 128>}]} {
    %c0 = arith.constant 0 : index
    %c0_0 = arith.constant 0 : index
    %c0_1 = arith.constant 0 : index
    %0 = vector.load %arg1[%c0, %c0_0, %c0_1] : memref<1x128x128xbf16, #tpu.memory_space<vmem>>, vector<1x128x128xbf16>
    %1 = vector.shape_cast %0 : vector<1x128x128xbf16> to vector<128x128xbf16>
    %c0_2 = arith.constant 0 : index
    %c0_3 = arith.constant 0 : index
    %c0_4 = arith.constant 0 : index
    %2 = vector.load %arg2[%c0_2, %c0_3, %c0_4] : memref<1x16x128xbf16, #tpu.memory_space<vmem>>, vector<1x16x128xbf16>
    %3 = vector.shape_cast %2 : vector<1x16x128xbf16> to vector<16x128xbf16>
    %cst = arith.constant dense<0.000000e+00> : vector<16x128xf32>
    %4 = tpu.matmul %3, %1, %cst {dimension_numbers = #tpu.dot_dimension_numbers<[1], [0], [0], [1], [0, 0, 1, 1], [], []>} : vector<16x128xbf16>, vector<128x128xbf16>, vector<16x128xf32> -> vector<16x128xf32>
    %c0_5 = arith.constant 0 : index
    %c0_6 = arith.constant 0 : index
    %5 = vector.load %arg3[%c0_5, %c0_6] : memref<32x16xbf16, #tpu.memory_space<vmem>>, vector<32x16xbf16>
    %6 = arith.truncf %4 : vector<16x128xf32> to vector<16x128xbf16>
    %cst_7 = arith.constant dense<0.000000e+00> : vector<32x128xf32>
    %7 = tpu.matmul %5, %6, %cst_7 {dimension_numbers = #tpu.dot_dimension_numbers<[1], [0], [0], [1], [0, 0, 1, 1], [], []>} : vector<32x16xbf16>, vector<16x128xbf16>, vector<32x128xf32> -> vector<32x128xf32>
    %c0_8 = arith.constant 0 : index
    %c0_9 = arith.constant 0 : index
    %8 = vector.load %arg4[%c0_8, %c0_9] : memref<32x1xf32, #tpu.memory_space<vmem>>, vector<32x1xf32>
    %9 = vector.broadcast %8 : vector<32x1xf32> to vector<32x128xf32>
    %10 = arith.addf %7, %9 : vector<32x128xf32>
    %cst_10 = arith.constant 0.000000e+00 : f32
    %11 = vector.broadcast %cst_10 : f32 to vector<32x128xf32>
    %12 = arith.maximumf %10, %11 : vector<32x128xf32>
    %c0_11 = arith.constant 0 : index
    %c0_12 = arith.constant 0 : index
    %13 = vector.load %arg5[%c0_11, %c0_12] : memref<8x32xbf16, #tpu.memory_space<vmem>>, vector<8x32xbf16>
    %14 = arith.truncf %12 : vector<32x128xf32> to vector<32x128xbf16>
    %cst_13 = arith.constant dense<0.000000e+00> : vector<8x128xf32>
    %15 = tpu.matmul %13, %14, %cst_13 {dimension_numbers = #tpu.dot_dimension_numbers<[1], [0], [0], [1], [0, 0, 1, 1], [], []>} : vector<8x32xbf16>, vector<32x128xbf16>, vector<8x128xf32> -> vector<8x128xf32>
    %16 = arith.truncf %15 : vector<8x128xf32> to vector<8x128xbf16>
    %cst_14 = arith.constant dense<0.000000e+00> : vector<8x128xf32>
    %17 = tpu.matmul %16, %1, %cst_14 {dimension_numbers = #tpu.dot_dimension_numbers<[1], [0], [0], [1], [0, 0, 1, 1], [], []>} : vector<8x128xbf16>, vector<128x128xbf16>, vector<8x128xf32> -> vector<8x128xf32>
    %c0_15 = arith.constant 0 : index
    %c0_16 = arith.constant 0 : index
    %18 = vector.load %arg6[%c0_15, %c0_16] : memref<8x1xf32, #tpu.memory_space<vmem>>, vector<8x1xf32>
    %19 = vector.broadcast %18 : vector<8x1xf32> to vector<8x128xf32>
    %20 = arith.addf %17, %19 : vector<8x128xf32>
    %cst_17 = arith.constant dense<0xFF800000> : vector<128xf32>
    %21 = vector.multi_reduction <maximumf>, %20, %cst_17 [0] : vector<8x128xf32> to vector<128xf32>
    %22 = vector.shape_cast %21 : vector<128xf32> to vector<1x128xf32>
    %23 = vector.broadcast %22 : vector<1x128xf32> to vector<8x128xf32>
    %24 = arith.subf %20, %23 : vector<8x128xf32>
    %25 = math.exp %24 : vector<8x128xf32>
    %cst_18 = arith.constant dense<0.000000e+00> : vector<128xf32>
    %26 = vector.multi_reduction <add>, %25, %cst_18 [0] : vector<8x128xf32> to vector<128xf32>
    %27 = vector.shape_cast %26 : vector<128xf32> to vector<1x128xf32>
    %28 = math.log %27 : vector<1x128xf32>
    %29 = vector.broadcast %28 : vector<1x128xf32> to vector<8x128xf32>
    %30 = arith.subf %24, %29 : vector<8x128xf32>
    %c0_19 = arith.constant 0 : index
    %c0_20 = arith.constant 0 : index
    %c0_21 = arith.constant 0 : index
    %31 = vector.load %arg7[%c0_19, %c0_20, %c0_21] : memref<1x8x128xf32, #tpu.memory_space<vmem>>, vector<1x8x128xf32>
    %32 = vector.shape_cast %31 : vector<1x8x128xf32> to vector<8x128xf32>
    %33 = vector.shape_cast %30 : vector<8x128xf32> to vector<1x8x128xf32>
    tpu.vector_store %arg7[%c0_19, %c0_20, %c0_21], %33 {strides = array<i32>} : memref<1x8x128xf32, #tpu.memory_space<vmem>>, vector<1x8x128xf32>,
    return
  }
  func.func @transform_0(%arg0: i32) -> (i32, i32, i32) {
    %c0_i32 = arith.constant 0 : i32
    %c0_i32_0 = arith.constant 0 : i32
    %c0_i32_1 = arith.constant 0 : i32
    return %arg0, %c0_i32, %c0_i32_0 : i32, i32, i32
  }
  func.func @transform_1(%arg0: i32) -> (i32, i32, i32) {
    %c0_i32 = arith.constant 0 : i32
    %c0_i32_0 = arith.constant 0 : i32
    %c0_i32_1 = arith.constant 0 : i32
    return %arg0, %c0_i32, %c0_i32_0 : i32, i32, i32
  }
  func.func @transform_2(%arg0: i32) -> (i32, i32) {
    %c0_i32 = arith.constant 0 : i32
    %c0_i32_0 = arith.constant 0 : i32
    %c0_i32_1 = arith.constant 0 : i32
    return %c0_i32, %c0_i32_0 : i32, i32
  }
  func.func @transform_3(%arg0: i32) -> (i32, i32) {
    %c0_i32 = arith.constant 0 : i32
    %c0_i32_0 = arith.constant 0 : i32
    %c0_i32_1 = arith.constant 0 : i32
    return %c0_i32, %c0_i32_0 : i32, i32
  }
  func.func @transform_4(%arg0: i32) -> (i32, i32) {
    %c0_i32 = arith.constant 0 : i32
    %c0_i32_0 = arith.constant 0 : i32
    %c0_i32_1 = arith.constant 0 : i32
    return %c0_i32, %c0_i32_0 : i32, i32
  }
  func.func @transform_5(%arg0: i32) -> (i32, i32) {
    %c0_i32 = arith.constant 0 : i32
    %c0_i32_0 = arith.constant 0 : i32
    %c0_i32_1 = arith.constant 0 : i32
    return %c0_i32, %c0_i32_0 : i32, i32
  }
  func.func @transform_6(%arg0: i32) -> (i32, i32, i32) {
    %c0_i32 = arith.constant 0 : i32
    %c0_i32_0 = arith.constant 0 : i32
    %c0_i32_1 = arith.constant 0 : i32
    return %arg0, %c0_i32, %c0_i32_0 : i32, i32, i32
  }
}

</mosaic_0001>

<bundles_post_ra>
// kernel: tpu_custom_call.1
= control target key start
LH: loop header
LB: loop body
LE: loop exit
PB: predicated region body
PF: predicated region fallthrough
CT: control target
= control target key end

     0   :  { %11 = vsyncpa [#allocation3], 0  ;;  %s1287_s0 = inlined_call_operand.hbm [shape: bf16[2,128,128], index: 0, kind: input, shape index: {}]   ;;  %s1288_s1 = inlined_call_operand.vmem [shape: bf16[2,16,128], index: 1, kind: input, shape index: {}]   ;;  %s1289_s2 = inlined_call_operand.vmem [shape: bf16[32,16], index: 2, kind: input, shape index: {}]   ;;  %s1290_s3 = inlined_call_operand.vmem [shape: f32[32,1], index: 3, kind: input, shape index: {}]   ;;  %s1291_s4 = inlined_call_operand.vmem [shape: bf16[8,32], index: 4, kind: input, shape index: {}]   ;;  %s1292_s5 = inlined_call_operand.vmem [shape: f32[8,1], index: 5, kind: input, shape index: {}]   ;;  %s1293_s6 = inlined_call_operand.hbm [shape: f32[2,8,128], index: 6, kind: output, shape index: {}]  }
   0x1   :  { %13 = vsyncpa [#allocation3 + $0x1], 0 }
   0x2   :  { %14 = vsyncpa [#allocation4], 0 }
   0x3   :  { %16 = vsyncpa [#allocation4 + $0x1], 0  ;;  %s1029_s21 = smov 0   ;;  %s1031_s22 = smov 0  }
   0x4   :  { %s1033_s23 = smov 0   ;;  %s1035_s24 = smov 0  }
   0x5 LB: > { %s1050_s25 = sadd.s32 4294967295, %s985_s24   ;;  %s712_s26 = sadd.s32 4294967294, %s985_s24   ;;  %s985_s24 = sphi %s1035_s24, %s1306_s24   ;;  %s981_s23 = sphi %s1033_s23, %s1305_s23   ;;  %s977_s22 = sphi %s1031_s22, %s1304_s22   ;;  %s973_s21 = sphi %s1029_s21, %s1303_s21  }
   0x6   : > { %s1054_s27 = sadd.s32 1, %s985_s24   ;;  %s29_s28 = sadd.s32 1, %s981_s23 }
   0x7   : > { %s26_s29 = ssub.s32 %s985_s24, %s1054_s27  ;;  %p36_p0 = scmp.ne.s32.totalorder %s981_s23, %s977_s22 }
   0x8   : > { %p27_p1 = scmp.eq.s32.totalorder %s26_s29, 0  ;;  %p37_p2 = scmp.eq.s32.totalorder %s985_s24, 0 }
   0x9   : > { %p42_p3 = scmp.ne.s32.totalorder %s977_s22, %s973_s21  ;;  %p43_p4 = scmp.eq.s32.totalorder %s1050_s25, 0 }
   0xa   : > { %s1066_s30 = scalar_select %p27_p1, %s981_s23, %s29_s28  }
   0xb   : > { %p1068_p5 = por %p37_p2, %p36_p0  ;;  %p1072_p6 = por %p43_p4, %p42_p3 }
   0xc   : > { %p176_p7 = scmp.eq.s32.totalorder %s1050_s25, 1  ;;  %p182_p8 = scmp.eq.s32.totalorder %s712_s26, 1 }
   0xd   : > { %p833_p10 = scmp.lt.s32.totalorder %s985_s24, 2  ;;  %s214_s11 = sand.u32 1, %s981_s23  }
   0xe   : > { %p1079_p11 = por %p176_p7, %p36_p0  ;;  %p1083_p12 = por %p182_p8, %p42_p3 }
   0xf   : > { %s741_s12 = sshll.u32 %s985_s24, 10  ;;  %s715_s13 = sshll.u32 %s214_s11, 6 }
  0x10   : > { %s1297_s9 = scalar_select %p1079_p11, 1, 0 }
  0x11   : > { %s1298_s10 = scalar_select %p1083_p12, 1, 0 }
  0x12   : > { %s1092_s16 = scalar_lea.hbm %s1287_s0, %s741_s12  ;;  %s218_s17 = scalar_lea.vmem [#allocation2], %s715_s13 }
  0x13   : > { %s225_s18 = sshll.u32 %s218_s17, 4  ;;  %p1096_p13 = pnand %p833_p10, %p1068_p5  ;;  %s1100_s18 = int_to_ptr.vmem [resolvable:$true] %s225_s18 }
  0x14   : > { %s1102_s20 = scalar_lea.sflag [#allocation3], %s214_s11  ;;  %s889_s26 = scalar_lea.hbm %s1092_s16, 1024 }
  0x15   : > { %p890_p0 = scmp.ne.s32.totalorder %s1092_s16, %s889_s26  ;;  %p891_p1 = pneg %p1096_p13 }
  0x16   : > { %s894_s7 = scalar_lea.hbm %s1287_s0, 2048  ;;  %p895_p4 = scmp.lt.u32.totalorder %s1092_s16, %s1287_s0 }
  0x17   : > { %p892_p2 = pnand %p891_p1, %p890_p0  ;;  %p896_p5 = scmp.lt.u32.totalorder %s894_s7, %s889_s26 }
  0x18   : > { %p898_p8 = scmp.lt.u32.totalorder %s889_s26, %s1092_s16 }
  0x19   : > { %p893_p3 = pneg %p892_p2  ;;  %p897_p7 = por %p896_p5, %p895_p4 }
  0x1b   : > { %p899_p10 = por %p898_p8, %p897_p7 }
  0x1d   : > { %p900_p9 = pnand %p899_p10, %p893_p3 }
  0x1f   : > { %903 = shalt.err (!%p900_p9)
}
  0x20   : > { %s904_s11 = scalar_lea.vmem %s1100_s18, 1024  ;;  %s987_s14 = smov [#allocation2]  }
  0x21   : > { %p905_p0 = scmp.ne.s32.totalorder %s1100_s18, %s904_s11  ;;  %s909_s15 = sshll.u32 %s987_s14, 4  ;;  %s910_s15 = int_to_ptr.vmem [resolvable:$false] %s909_s15 }
  0x22   : > { %s911_s17 = scalar_lea.vmem %s910_s15, 2048  ;;  %p912_p11 = scmp.lt.s32.totalorder %s1100_s18, %s910_s15 }
  0x23   : > { %p907_p2 = pnand %p905_p0, %p891_p1  ;;  %p913_p4 = scmp.lt.s32.totalorder %s911_s17, %s904_s11 }
  0x25   : > { %p908_p12 = pneg %p907_p2  ;;  %p914_p5 = por %p913_p4, %p912_p11 }
  0x27   : > { %p915_p7 = pnand %p914_p5, %p908_p12 }
  0x29   : > { %918 = shalt.err (!%p915_p7)
}
  0x2a   : > { %s988_s26 = smov 64   ;;  %s989_s28 = smov 4  }
  0x2b   : > { %828 = dma.hbm_to_vmem [thread:$0]  (!%p1096_p13), %s1092_s16, 1024, %s1100_s18, %s1102_s20, %s988_s26, %s988_s26, %s989_s28  }
  0x2c   : > { %p718_p9 = scmp.ge.s32.totalorder %s985_s24, 1  ;;  %p241_p1 = scmp.lt.s32.totalorder %s985_s24, 3 }
  0x2e   : > { %p242_p3 = pnand %p718_p9, %p241_p1 }
  0x2f   : > { %s1133_s29 = sand.u32 (!%p242_p3), 1, %s977_s22  }
  0x30   : > { %245 = sbr.rel (%p242_p3) target bundleno = 1034 (0x40a), region = 44  ;;  %s719_s7 = sshll.u32 (!%p242_p3), %s1133_s29, 6 }
  0x31   : > { %s248_s12 = scalar_lea.sflag (!%p242_p3), [#allocation3], %s1133_s29  ;;  %s1137_s13 = scalar_lea.vmem (!%p242_p3), [#allocation2], %s719_s7 }
  0x37   : > { %964 = dma.done.wait (%p1072_p6), %s248_s12, 1024  }
  0x38   : > { %966 = vsyncadd (%p1072_p6), %s248_s12, 4294966272  ;;  %v990_v0 = vmov 0.0   ;;  %vm991_vm0 = vmmov 0   ;;  %p285_p6 = scmp.lt.s32.totalorder %s1050_s25, 1  ;;  %v1151_v1 = vld [vmem:[%s1137_s13] sm:$0xff]   ;;  %v1156_v2 = vld [vmem:[%s1137_s13 + $0x8] sm:$0xff]  }
  0x39   : > { %767 = vmatprep.subr.bf16.mxu0 %v990_v0  ;;  %783 = vmatprep.mubr.msk.bf16.mxu0 %vm991_vm0, %v990_v0  ;;  %v1161_v3 = vld [vmem:[%s1137_s13 + $0x10] sm:$0xff]   ;;  %v1169_v4 = vld [vmem:[%s1137_s13 + $0x18] sm:$0xff]   ;;  %v1174_v5 = vld [vmem:[%s1137_s13 + $0x20] sm:$0xff]   ;;  %vm443_vm1 = vcmask 130048   ;;  %v992_v13 = vmov 0   ;;  %vm506_vm2 = vcmask 261120  }
  0x3a   : > { %793 = vmatprep.subr.bf16.mxu1 %v990_v0  ;;  %797 = vmatprep.mubr.msk.bf16.mxu1 %vm991_vm0, %v990_v0  ;;  %s286_s8 = scalar_select %p285_p6, %s1050_s25, 1  ;;  %v1179_v6 = vld [vmem:[%s1137_s13 + $0x28] sm:$0xff]   ;;  %v1184_v7 = vld [vmem:[%s1137_s13 + $0x30] sm:$0xff]   ;;  %v1189_v8 = vld [vmem:[%s1137_s13 + $0x38] sm:$0xff]  }
  0x3b   : > { %768 = vmatpush3.bf16.msra.mxu0 %v1151_v1  ;;  %v883_v10 = vld [vmem:[%s1289_s2] sm:$0xff]   ;;  %v411_v12 = vld [vmem:[%s1290_s3 + $0x10] sm:$0xff]  ;;  %872 = vset.pattern.permute.xlu0 %v992_v13  ;;  %v410_v14 = vld [vmem:[%s1290_s3 + $0x8] sm:$0xff]  ;;  %s720_s15 = sshll.u32 %s1133_s29, 3  ;;  %s738_s17 = sshll.u32 %s1050_s25, 7 }
  0x3c   : > { %769 = vmatprep.subr.bf16.mxu0 %v990_v0  ;;  %s742_s16 = sshll.u32 %s286_s8, 3  ;;  %v409_v11 = vld [vmem:[%s1290_s3] sm:$0xff]  ;;  %873 = vset.pattern.permute.xlu1 %v992_v13  ;;  %v412_v15 = vld [vmem:[%s1290_s3 + $0x18] sm:$0xff]  ;;  %v884_v22 = vld [vmem:[%s1289_s2 + $0x8] sm:$0xff]   ;;  %s284_s26 = scalar_lea.vmem [#allocation5], %s720_s15 }
  0x3d   : > { %s289_s20 = scalar_lea.vmem %s1288_s1, %s742_s16  ;;  %415 = vperm.xlu0 %872, %v409_v11   ;;  %425 = vperm.xlu1 %873, %v411_v12   ;;  %v551_v16 = vld [vmem:[%s1292_s5] sm:$0xff]  ;;  %s630_s28 = sshll.u32 %s284_s26, 4  ;;  %s1245_s28 = int_to_ptr.vmem [resolvable:$true] %s630_s28 }
  0x3e   : > { %v882_v9 = vld [vmem:[%s289_s20] sm:$0xff]   ;;  %s1243_s13 = scalar_lea.hbm %s1293_s6, %s738_s17  ;;  %s617_s8 = scalar_lea.sflag [#allocation4], %s1133_s29 }
  0x3f   : > { %770 = vmatpush3.bf16.msra.mxu0 %v1156_v2  ;;  %v503_v41 = vld [vmem:[%s1291_s4] sm:$0xf]  ;;  %s919_s16 = scalar_lea.vmem %s1245_s28, 128  ;;  %p1300_p12 = scmp.ne.s32.totalorder %s1297_s9, 0 }
  0x40   : > { %771 = vmatprep.subr.bf16.mxu0 %v990_v0  ;;  %p920_p11 = scmp.ne.s32.totalorder %s1245_s28, %s919_s16  ;;  %s993_s25 = smov [#allocation5]  }
  0x41   : > { %420 = vperm.xlu0 %872, %v410_v14   ;;  %430 = vperm.xlu1 %873, %v412_v15   ;;  %s923_s18 = sshll.u32 %s993_s25, 4  ;;  %s924_s18 = int_to_ptr.vmem [resolvable:$false] %s923_s18 }
  0x42   : > { %p921_p13 = pnand %p920_p11, %p1300_p12  ;;  %s925_s19 = scalar_lea.vmem %s924_s18, 256 }
  0x43   : > { %772 = vmatpush3.bf16.msra.mxu0 %v1161_v3  ;;  %p926_p10 = scmp.lt.s32.totalorder %s1245_s28, %s924_s18  ;;  %p927_p0 = scmp.lt.s32.totalorder %s925_s19, %s919_s16 }
  0x44   : > { %773 = vmatprep.subr.bf16.mxu0 %v990_v0  ;;  %p922_p8 = pneg %p921_p13 }
  0x45   : > { %554 = vperm.xlu0 %872, %v551_v16   ;;  %p928_p2 = por %p927_p0, %p926_p10 }
  0x47   : > { %774 = vmatpush3.bf16.msra.mxu0 %v1169_v4  ;;  %p929_p4 = pnand %p928_p2, %p922_p8 }
  0x48   : > { %775 = vmatprep.subr.bf16.mxu0 %v990_v0 }
  0x4b   : > { %776 = vmatpush3.bf16.msra.mxu0 %v1174_v5 }
  0x4c   : > { %777 = vmatprep.subr.bf16.mxu0 %v990_v0 }
  0x4f   : > { %778 = vmatpush3.bf16.msra.mxu0 %v1179_v6 }
  0x50   : > { %779 = vmatprep.subr.bf16.mxu0 %v990_v0 }
  0x53   : > { %780 = vmatpush3.bf16.msra.mxu0 %v1184_v7 }
  0x54   : > { %781 = vmatprep.subr.bf16.mxu0 %v990_v0 }
  0x57   : > { %782 = vmatpush3.bf16.msra.mxu0 %v1189_v8 }
  0x5a   : > { %784 = vmatmul.mubr.bf16.vlgmr.msra.gmra.mrb[0].mxu0 %v882_v9 }
  0x5b   : > { %789 = vmatprep.mubr.msk.bf16.mxu0 %vm443_vm1, %v883_v10 }
  0xbc   : > { %v426_v23 = vpop.permute.xlu1 %425  ;;  %v416_v24 = vpop.permute.xlu0 %415 }
  0xc0   : > { %v431_v26 = vpop.permute.xlu1 %430  ;;  %v421_v31 = vpop.permute.xlu0 %420 }
  0xc4   : > { %v555_v47 = vpop.permute.xlu0 %554 }
 0x12d   : > { %v397_v17 = vpop.f32.mrb[0].mxu0 }
 0x12e   : > { %v785_v18 = vpop.f32.mrb[1].mxu0 }
 0x12f   : > { %v400_v19 = vpop.f32.mrb[2].mxu0 }
 0x130   : > { %v408_v20 = vpack.c.bf16 %v400_v19, %v397_v17  ;;  %v786_v21 = vpop.f32.mrb[3].mxu0 }
 0x132   : > { %787 = vmatprep.subr.bf16.mxu0 %v408_v20 }
 0x133   : > { %788 = vmatpush3.bf16.msra.mxu0 %v408_v20 }
 0x136   : > { %790 = vmatmul.mubr.msk.bf16.vlgmr.msra.gmra.mrb[4].mxu0 %vm443_vm1, %v884_v22 }
 0x209   : > { %v791_v25 = vpop.f32.mrb[4].mxu0 }
 0x20a   : > { %v493_v27 = vadd.f32 %v791_v25, %v426_v23  ;;  %v484_v28 = vpop.f32.mrb[5].mxu0 }
 0x20b   : > { %v485_v29 = vadd.f32 %v484_v28, %v416_v24  ;;  %v792_v30 = vpop.f32.mrb[6].mxu0 }
 0x20c   : > { %v487_v32 = vpop.f32.mrb[7].mxu0  ;;  %v496_v33 = vadd.f32 %v792_v30, %v431_v26  ;;  %v501_v35 = vmax.f32 %v493_v27, 0.0 }
 0x20d   : > { %v488_v34 = vadd.f32 %v487_v32, %v421_v31  ;;  %v499_v37 = vmax.f32 %v485_v29, 0.0 }
 0x20e   : > { %v502_v36 = vmax.f32 %v496_v33, 0.0 }
 0x20f   : > { %v500_v38 = vmax.f32 %v488_v34, 0.0 }
 0x210   : > { %v505_v39 = vpack.c.bf16 %v502_v36, %v501_v35 }
 0x211   : > { %v504_v40 = vpack.c.bf16 %v500_v38, %v499_v37 }
 0x213   : > { %794 = vmatpush3.bf16.msra.mxu1 %v504_v40 }
 0x214   : > { %795 = vmatprep.subr.bf16.mxu1 %v990_v0 }
 0x217   : > { %796 = vmatpush3.bf16.msra.mxu1 %v505_v39 }
 0x218   : > { %801 = vmatprep.subr.bf16.mxu1 %v990_v0 }
 0x21a   : > { %798 = vmatmul.mubr.msk.bf16.vlgmr.msra.gmra.mrb[0].mxu1 %vm506_vm2, %v503_v41 }
 0x21b   : > { %802 = vmatpush3.bf16.msra.mxu1 %v1151_v1  ;;  %817 = vmatprep.mubr.msk.bf16.mxu1 %vm991_vm0, %v990_v0 }
 0x21c   : > { %803 = vmatprep.subr.bf16.mxu1 %v990_v0 }
 0x21f   : > { %804 = vmatpush3.bf16.msra.mxu1 %v1156_v2 }
 0x220   : > { %805 = vmatprep.subr.bf16.mxu1 %v990_v0 }
 0x223   : > { %806 = vmatpush3.bf16.msra.mxu1 %v1161_v3 }
 0x224   : > { %807 = vmatprep.subr.bf16.mxu1 %v990_v0 }
 0x227   : > { %808 = vmatpush3.bf16.msra.mxu1 %v1169_v4 }
 0x228   : > { %809 = vmatprep.subr.bf16.mxu1 %v990_v0 }
 0x22b   : > { %810 = vmatpush3.bf16.msra.mxu1 %v1174_v5 }
 0x22c   : > { %811 = vmatprep.subr.bf16.mxu1 %v990_v0 }
 0x22f   : > { %812 = vmatpush3.bf16.msra.mxu1 %v1179_v6 }
 0x230   : > { %813 = vmatprep.subr.bf16.mxu1 %v990_v0 }
 0x233   : > { %814 = vmatpush3.bf16.msra.mxu1 %v1184_v7 }
 0x234   : > { %815 = vmatprep.subr.bf16.mxu1 %v990_v0 }
 0x237   : > { %816 = vmatpush3.bf16.msra.mxu1 %v1189_v8 }
 0x2ed   : > { %v544_v42 = vpop.f32.mrb[0].mxu1 }
 0x2ee   : > { %v550_v43 = vpack.c.bf16 %v544_v42, %v544_v42  ;;  %v799_v44 = vpop.f32.mrb[1].mxu1 }
 0x2ef   : > { %v547_v45 = vpop.f32.mrb[2].mxu1 }
 0x2f0   : > { %818 = vmatmul.mubr.bf16.vlgmr.msra.gmra.mrb[4].mxu1 %v550_v43  ;;  %v800_v46 = vpop.f32.mrb[3].mxu1 }
 0x3c3   : > { %v591_v48 = vpop.f32.mrb[4].mxu1 }
 0x3c4   : > { %v592_v49 = vadd.f32 %v591_v48, %v555_v47  ;;  %v819_v50 = vpop.f32.mrb[5].mxu1 }
 0x3c5   : > { %v594_v51 = vpop.f32.mrb[6].mxu1 }
 0x3c6   : > { %v597_v52 = vrot.slane %v592_v49, 4  ;;  %v820_v53 = vpop.f32.mrb[7].mxu1 }
 0x3c8   : > { %v598_v54 = vmax.f32 %v592_v49, %v597_v52 }
 0x3ca   : > { %v599_v55 = vrot.slane %v598_v54, 2 }
 0x3cc   : > { %v600_v56 = vmax.f32 %v598_v54, %v599_v55 }
 0x3ce   : > { %v601_v57 = vrot.slane %v600_v56, 1 }
 0x3d0   : > { %v602_v58 = vmax.f32 %v600_v56, %v601_v57 }
 0x3d2   : > { %v603_v59 = vsub.f32 %v592_v49, %v602_v58 }
 0x3d4   : > { %v604_v60 = vmul.f32 1.442695, %v603_v59 }
 0x3d6   : > { %885 = vpow2.f32 %v604_v60 }
 0x3e0   : > { %v886_v61 = vpop.eup %885 }
 0x3e1   : > { %v606_v62 = vrot.slane %v886_v61, 4 }
 0x3e3   : > { %v607_v63 = vadd.f32 %v886_v61, %v606_v62 }
 0x3e5   : > { %v608_v0 = vrot.slane %v607_v63, 2 }
 0x3e7   : > { %v609_v1 = vadd.f32 %v608_v0, %v607_v63 }
 0x3e9   : > { %v610_v2 = vrot.slane %v609_v1, 1 }
 0x3eb   : > { %v611_v3 = vadd.f32 %v610_v2, %v609_v1 }
 0x3ed   : > { %887 = vlog2.f32 %v611_v3 }
 0x3f7   : > { %v888_v4 = vpop.eup %887 }
 0x3f8   : > { %v613_v5 = vmul.f32 0.6931472, %v888_v4 }
 0x3fa   : > { %v614_v6 = vsub.f32 %v603_v59, %v613_v5 }
 0x3fc   : > { %615 = vst [vmem:[%s284_s26] sm:$0xff] %v614_v6 }
 0x3fd   : > { %932 = shalt.err (!%p929_p4)
}
 0x3fe   : > { %s933_s29 = scalar_lea.hbm %s1243_s13, 128  ;;  %s937_s14 = scalar_lea.hbm %s1293_s6, 256 }
 0x3ff   : > { %p934_p5 = scmp.ne.s32.totalorder %s1243_s13, %s933_s29  ;;  %p938_p1 = scmp.lt.u32.totalorder %s1243_s13, %s1293_s6 }
 0x400   : > { %p939_p3 = scmp.lt.u32.totalorder %s937_s14, %s933_s29  ;;  %p941_p11 = scmp.lt.u32.totalorder %s933_s29, %s1243_s13 }
 0x401   : > { %p935_p7 = pnand %p934_p5, %p1300_p12 }
 0x402   : > { %p940_p6 = por %p939_p3, %p938_p1 }
 0x403   : > { %p936_p9 = pneg %p935_p7 }
 0x404   : > { %p942_p13 = por %p941_p11, %p940_p6 }
 0x406   : > { %p943_p8 = pnand %p942_p13, %p936_p9 }
 0x408   : > { %946 = shalt.err (!%p943_p8)
}
 0x409   : > { %823 = dma.vmem_to_hbm [thread:$0]  (%p1300_p12), %s1245_s28, 128, %s1243_s13, %s617_s8  }
 0x40a PF: > { %s642_s26 = sand.u32 1, %s973_s21   ;;  %p1301_p10 = scmp.ne.s32.totalorder %s1298_s10, 0 }
 0x40b   : > { %p1302_p0 = scmp.ge.s32.totalorder %s985_s24, 2  ;;  %s643_s7 = scalar_lea.sflag [#allocation4], %s642_s26 }
 0x40d   : > { %p830_p2 = pnand %p1302_p0, %p1301_p10 }
 0x40f   : > { %968 = dma.done.wait (!%p830_p2), %s643_s7, 128  }
 0x410   : > { %970 = vsyncadd (!%p830_p2), %s643_s7, 4294967168  ;;  %p19_p4 = scmp.ge.s32.totalorder %s1054_s27, 4   ;;  %s1303_s21 = smov %s977_s22 }
 0x411   : > { %s1304_s22 = smov %s981_s23  ;;  %s1305_s23 = smov %s1066_s30 }
 0x412   : > { %s1306_s24 = smov %s1054_s27  ;;  %21 = sbr.rel (!%p19_p4) target bundleno = 5 (0x5), region = 92 }
 0x419   :  { %648 = vsyncpa [#allocation3], 1 }
 0x41a   :  { %650 = vsyncpa [#allocation3 + $0x1], 1 }
 0x41b   :  { %651 = vsyncpa [#allocation4], 1 }
 0x41c   :  { %653 = vsyncpa [#allocation4 + $0x1], 1 }

</bundles_post_ra>
